<compile_context>
chip_gen: v6e
topology: v6e:2x2x1
jax: 0.10.0
libtpu: 0.0.40
codegen_flags: <defaults>
</compile_context>

<pallas_src>
import jax
import jax.numpy as jnp
from jax.experimental import pallas as pl
from jax.experimental.pallas import tpu as pltpu

IN_FEATURES = 2
OUT_FEATURES = 1

_LANES = 128
_SUBLANES = 8
_MAX_TILE_ROWS = 2048          # 2048 rows x 128 lanes = 256Ki samples per grid step
_MEGACORE_MIN_ROWS = 64        # force >=2 grid steps once a tile would be >=8Ki samples


def _linear_kernel(xt_ref, w_ref, b_ref, o_ref):
    # xt_ref: (2, TR, 128) f32 in VMEM   (feature, sublane-rows, lanes)
    # w_ref:  (2,) f32 in SMEM
    # b_ref:  (1,) f32 in SMEM
    # o_ref:  (TR, 128) f32 in VMEM
    w0 = w_ref[0]
    w1 = w_ref[1]
    b = b_ref[0]
    # Dense VPU multiply-add on full (TR, 128) tiles; no cross-lane reduce, no MXU.
    o_ref[...] = xt_ref[0] * w0 + xt_ref[1] * w1 + b


def _tiling(n):
    """Pick (tile_rows, rows_pad, steps) for a batch of n samples."""
    rows = pl.cdiv(n, _LANES)
    rows8 = pl.cdiv(rows, _SUBLANES) * _SUBLANES      # pad granularity: 1024 samples
    steps = max(1, pl.cdiv(rows8, _MAX_TILE_ROWS))
    if steps == 1 and rows8 >= 2 * _MEGACORE_MIN_ROWS:
        steps = 2                                     # let both v7x TensorCores work
    tile_rows = pl.cdiv(pl.cdiv(rows8, steps), _SUBLANES) * _SUBLANES
    rows_pad = steps * tile_rows                      # waste < 8 rows per step
    return tile_rows, rows_pad, steps


def linear_classifier_feature_major(xt, weight, bias, *, valid_n=None):
    """Forward pass on feature-major input.  xt: (2, N) -> (N, 1) float32."""
    in_f, n = xt.shape
    assert in_f == IN_FEATURES
    if valid_n is None:
        valid_n = n

    tile_rows, rows_pad, steps = _tiling(n)
    n_pad = rows_pad * _LANES

    xt = xt.astype(jnp.float32)
    if n_pad != n:
        xt = jnp.pad(xt, ((0, 0), (0, n_pad - n)))
    xt = xt.reshape(IN_FEATURES, rows_pad, _LANES)    # free row-major reshape

    w_flat = weight.reshape(IN_FEATURES).astype(jnp.float32)   # (2,)  -> SMEM
    b_flat = bias.reshape(OUT_FEATURES).astype(jnp.float32)    # (1,)  -> SMEM

    out = pl.pallas_call(
        _linear_kernel,
        out_shape=jax.ShapeDtypeStruct((rows_pad, _LANES), jnp.float32),
        grid=(steps,),
        in_specs=[
            pl.BlockSpec((IN_FEATURES, tile_rows, _LANES), lambda i: (0, i, 0)),
            pl.BlockSpec(memory_space=pltpu.MemorySpace.SMEM),
            pl.BlockSpec(memory_space=pltpu.MemorySpace.SMEM),
        ],
        out_specs=pl.BlockSpec((tile_rows, _LANES), lambda i: (i, 0)),
        compiler_params=pltpu.CompilerParams(
            dimension_semantics=("parallel",),
            vmem_limit_bytes=32 * 1024 * 1024,
        ),
    )(xt, w_flat, b_flat)

    # Free reshape back to sample-major, then trim the padding.
    return out.reshape(n_pad, OUT_FEATURES)[:valid_n]


def linear_classifier(x, weight, bias):
    """Drop-in nn.Linear(2, 1) forward.  x: (N, 2) -> (N, 1) float32."""
    n, in_f = x.shape
    assert in_f == IN_FEATURES
    # TODO(synk): for large batches, fuse this transpose into the data producer and
    # call linear_classifier_feature_major directly (saves one full HBM pass).
    return linear_classifier_feature_major(x.T, weight, bias, valid_n=n)


if __name__ == "__main__":
    key = jax.random.PRNGKey(0)
    kx, kw, kb = jax.random.split(key, 3)

    # Linear(2, 1) parameters: W (1, 2), b (1,), PyTorch-style uniform init.
    bound = 1.0 / (IN_FEATURES ** 0.5)
    weight = jax.random.uniform(kw, (OUT_FEATURES, IN_FEATURES),
                                jnp.float32, -bound, bound)
    bias = jax.random.uniform(kb, (OUT_FEATURES,), jnp.float32, -bound, bound)

    # Small batch of 2-D points (deliberately not a multiple of any tile size).
    N = 8
    x = jax.random.normal(kx, (N, IN_FEATURES), jnp.float32)

    out = jax.block_until_ready(linear_classifier(x, weight, bias))

    # Cross-check against plain JAX reference.
    ref = x @ weight.T + bias
    assert out.shape == (N, OUT_FEATURES)
    assert jnp.allclose(out, ref, atol=1e-5, rtol=1e-5)

    print("KERNEL_OK")
</pallas_src>

<mosaic_0001>
module attributes {stable_mosaic.version = 11 : i64} {
  func.func @_linear_kernel(%arg0: i32, %arg1: memref<2x8x128xf32, #tpu.memory_space<vmem>>, %arg2: memref<2xf32, #tpu.memory_space<smem>>, %arg3: memref<1xf32, #tpu.memory_space<smem>>, %arg4: memref<8x128xf32, #tpu.memory_space<vmem>>) attributes {dimension_semantics = [#tpu.dimension_semantics<parallel>], iteration_bounds = array<i64: 1>, scalar_prefetch = 0 : i64, scratch_operands = 0 : i64, tpu.core_type = #tpu.core_type<tc>, window_params = [{transform_indices = @transform_0, window_bounds = array<i64: 2, 8, 128>}, {transform_indices = @transform_1, window_bounds = array<i64: 2>}, {transform_indices = @transform_2, window_bounds = array<i64: 1>}, {transform_indices = @transform_3, window_bounds = array<i64: 8, 128>}]} {
    %c0 = arith.constant 0 : index
    %0 = memref.load %arg2[%c0] : memref<2xf32, #tpu.memory_space<smem>>
    %c1 = arith.constant 1 : index
    %1 = memref.load %arg2[%c1] : memref<2xf32, #tpu.memory_space<smem>>
    %c0_0 = arith.constant 0 : index
    %2 = memref.load %arg3[%c0_0] : memref<1xf32, #tpu.memory_space<smem>>
    %c0_1 = arith.constant 0 : index
    %c0_2 = arith.constant 0 : index
    %c0_3 = arith.constant 0 : index
    %3 = vector.load %arg1[%c0_1, %c0_2, %c0_3] : memref<2x8x128xf32, #tpu.memory_space<vmem>>, vector<1x8x128xf32>
    %4 = vector.shape_cast %3 : vector<1x8x128xf32> to vector<8x128xf32>
    %5 = vector.broadcast %0 : f32 to vector<8x128xf32>
    %6 = arith.mulf %4, %5 : vector<8x128xf32>
    %c1_4 = arith.constant 1 : index
    %c0_5 = arith.constant 0 : index
    %c0_6 = arith.constant 0 : index
    %7 = vector.load %arg1[%c1_4, %c0_5, %c0_6] : memref<2x8x128xf32, #tpu.memory_space<vmem>>, vector<1x8x128xf32>
    %8 = vector.shape_cast %7 : vector<1x8x128xf32> to vector<8x128xf32>
    %9 = vector.broadcast %1 : f32 to vector<8x128xf32>
    %10 = arith.mulf %8, %9 : vector<8x128xf32>
    %11 = arith.addf %6, %10 : vector<8x128xf32>
    %12 = vector.broadcast %2 : f32 to vector<8x128xf32>
    %13 = arith.addf %11, %12 : vector<8x128xf32>
    %c0_7 = arith.constant 0 : index
    %c0_8 = arith.constant 0 : index
    %14 = vector.load %arg4[%c0_7, %c0_8] : memref<8x128xf32, #tpu.memory_space<vmem>>, vector<8x128xf32>
    tpu.vector_store %arg4[%c0_7, %c0_8], %13 {strides = array<i32>} : memref<8x128xf32, #tpu.memory_space<vmem>>, vector<8x128xf32>,
    return
  }
  func.func @transform_0(%arg0: i32) -> (i32, i32, i32) {
    %c0_i32 = arith.constant 0 : i32
    %c0_i32_0 = arith.constant 0 : i32
    %c0_i32_1 = arith.constant 0 : i32
    return %c0_i32, %arg0, %c0_i32_0 : i32, i32, i32
  }
  func.func @transform_1(%arg0: i32) -> i32 {
    %c0_i32 = arith.constant 0 : i32
    %c0_i32_0 = arith.constant 0 : i32
    return %c0_i32 : i32
  }
  func.func @transform_2(%arg0: i32) -> i32 {
    %c0_i32 = arith.constant 0 : i32
    %c0_i32_0 = arith.constant 0 : i32
    return %c0_i32 : i32
  }
  func.func @transform_3(%arg0: i32) -> (i32, i32) {
    %c0_i32 = arith.constant 0 : i32
    %c0_i32_0 = arith.constant 0 : i32
    return %arg0, %c0_i32 : i32, i32
  }
}

</mosaic_0001>

<bundles_post_ra>
// kernel: tpu_custom_call.1
= control target key start
LH: loop header
LB: loop body
LE: loop exit
PB: predicated region body
PF: predicated region fallthrough
CT: control target
= control target key end

     0   :  { %9 = vsyncpa [#allocation4], 0  ;;  %s174_s0 = inlined_call_operand.hbm [shape: f32[2,8,128], index: 0, kind: input, shape index: {}]   ;;  %s175_s1 = inlined_call_operand.vmem [shape: f32[2], index: 1, kind: input, shape index: {}]   ;;  %s176_s2 = inlined_call_operand.<no memory space> [shape: f32[1], index: 2, kind: input, shape index: {}]   ;;  %s177_s3 = inlined_call_operand.hbm [shape: f32[8,128], index: 3, kind: output, shape index: {}]  }
   0x1   :  { %10 = vsyncpa [#allocation6], 0 }
   0x2   :  { %11 = vsyncpa [#allocation5], 0  ;;  %s137_s12 = smov [#allocation3]   ;;  %s30_s16 = sshll.u32 %s175_s1, 4  ;;  %s31_s16 = int_to_ptr.vmem [resolvable:$true] %s30_s16 }
   0x3   :  { %s17_s13 = sshll.u32 %s137_s12, 4  ;;  %s18_s13 = int_to_ptr.vmem [resolvable:$true] %s17_s13 }
   0x4   :  { %s87_s17 = scalar_lea.vmem %s18_s13, 256  ;;  %p92_p1 = scmp.lt.s32.totalorder %s18_s13, %s18_s13 }
   0x5   :  { %p88_p0 = scmp.ne.s32.totalorder %s18_s13, %s87_s17  ;;  %p93_p2 = scmp.lt.s32.totalorder %s87_s17, %s87_s17 }
   0x7   :  { %p94_p3 = por %p93_p2, %p92_p1 }
   0x9   :  { %p95_p4 = pnand %p94_p3, %p88_p0 }
   0xb   :  { %98 = shalt.err (!%p95_p4)
}
   0xc   :  { %s138_s18 = smov 128   ;;  %s139_s19 = smov 8  }
   0xd   :  { %23 = dma.hbm_to_vmem [thread:$0]  %s174_s0, 256, %s18_s13, [#allocation4], %s138_s18, %s138_s18, %s139_s19  }
   0xe   :  { %s99_s22 = scalar_lea.vmem %s31_s16, 16  ;;  %p104_p6 = scmp.lt.s32.totalorder %s31_s16, %s31_s16 }
   0xf   :  { %p100_p5 = scmp.ne.s32.totalorder %s31_s16, %s99_s22  ;;  %p105_p7 = scmp.lt.s32.totalorder %s99_s22, %s99_s22 }
  0x11   :  { %p106_p8 = por %p105_p7, %p104_p6 }
  0x13   :  { %p107_p9 = pnand %p106_p8, %p100_p5 }
  0x15   :  { %110 = shalt.err (!%p107_p9)
}
  0x16   :  { %s140_s1 = smov [#allocation7]  }
  0x17   :  { %33 = dma.vmem_to_smem %s31_s16, 16, %s140_s1, [#allocation6]  }
  0x18   :  { %131 = dma.done.wait [#allocation4], 256  }
  0x19   :  { %132 = vsyncadd [#allocation4], 4294967040 }
  0x1a   :  { %133 = dma.done.wait [#allocation6], 16  }
  0x1b   :  { %134 = vsyncadd [#allocation6], 4294967280 }
  0x1c   :  { %42 = sfence }
  0x1d   :  { %s43_s23 = sld [smem:[#allocation7]]  ;;  %v46_v0 = vld [vmem:[#allocation3] sm:$0xff]  ;;  %v50_v1 = vld [vmem:[#allocation3 + $0x8] sm:$0xff]  ;;  %v54_v6 = vstv %s176_s2  ;;  %s141_s26 = smov [#allocation8]  }
  0x1e   :  { %s73_s24 = sld [smem:[#allocation7 + $0x1]]  ;;  %s63_s27 = sshll.u32 %s141_s26, 4  ;;  %s64_s27 = int_to_ptr.vmem [resolvable:$true] %s63_s27 }
  0x1f   :  { %s111_s28 = scalar_lea.vmem %s64_s27, 128  ;;  %p116_p11 = scmp.lt.s32.totalorder %s64_s27, %s64_s27 }
  0x20   :  { %p112_p10 = scmp.ne.s32.totalorder %s64_s27, %s111_s28  ;;  %p117_p12 = scmp.lt.s32.totalorder %s111_s28, %s111_s28 }
  0x22   :  { %p118_p13 = por %p117_p12, %p116_p11 }
  0x23   :  { %v47_v2 = vstv %s43_s23 }
  0x24   :  { %v48_v3 = vmul.f32 %v47_v2, %v46_v0  ;;  %v51_v4 = vstv %s73_s24  ;;  %p119_p0 = pnand %p118_p13, %p112_p10 }
  0x25   :  { %v52_v5 = vmul.f32 %v51_v4, %v50_v1 }
  0x27   :  { %v53_v7 = vadd.f32 %v52_v5, %v48_v3 }
  0x29   :  { %v55_v8 = vadd.f32 %v54_v6, %v53_v7 }
  0x2b   :  { %56 = vst [vmem:[#allocation8] sm:$0xff] %v55_v8 }
  0x2c   :  { %122 = shalt.err (!%p119_p0)
}
  0x2d   :  { %66 = dma.vmem_to_hbm [thread:$0]  %s64_s27, 128, %s177_s3, [#allocation5]  }
  0x2e   :  { %135 = dma.done.wait [#allocation5], 128  }
  0x2f   :  { %136 = vsyncadd [#allocation5], 4294967168 }
  0x30   :  { %70 = vsyncpa [#allocation4], 1 }
  0x31   :  { %71 = vsyncpa [#allocation5], 1 }
  0x32   :  { %72 = vsyncpa [#allocation6], 1 }

</bundles_post_ra>
